<compile_context>
chip_gen: v6e
topology: v6e:2x2x1
jax: 0.10.0
libtpu: 0.0.40
codegen_flags: <defaults>
</compile_context>

<pallas_src>
import functools

import jax
import jax.numpy as jnp
from jax.experimental import pallas as pl
from jax.experimental.pallas import tpu as pltpu

_BN_EPS = 1e-5
_MIB = 1024 * 1024


# ---------------------------------------------------------------------------
# Tiling heuristics
# ---------------------------------------------------------------------------
def _vmem_budget():
    """Returns (per-x-block byte budget, scoped-VMEM limit to request)."""
    cap = 64 * _MIB
    try:
        cap = int(getattr(pltpu.get_tpu_info(), "vmem_capacity_bytes", cap))
    except Exception:
        pass
    # Double-buffered input + output blocks (~4x block_budget) stay well
    # under half of VMEM on every generation.
    block_budget = max(2 * _MIB, cap // 16)          # 4 MiB v7x, 8 MiB v5e/v6e
    vmem_limit = max(32 * _MIB, min(cap // 2, 64 * _MIB))
    return block_budget, vmem_limit


def _choose_tile_c(C, bytes_per_channel, budget):
    """Largest channel tile that (a) divides C, (b) is a multiple of 8 or is
    C itself (Mosaic sublane rule on the second-to-last block dim), and
    (c) keeps one x block within `budget` bytes."""
    if C * bytes_per_channel <= budget:
        return C
    div8 = [d for d in range(8, C, 8) if C % d == 0]
    fitting = [d for d in div8 if d * bytes_per_channel <= budget]
    if fitting:
        return max(fitting)
    if div8:
        return min(div8)        # smallest legal tile; may overshoot (rare)
    # TODO(synk): a C with no multiple-of-8 divisor whose full-C block exceeds
    # the budget would need an HW-tiled two-pass fallback; not hit by typical
    # conv feature-map shapes.
    return C


def _choose_tile_n(N, bytes_per_sample_tile, budget):
    for d in range(N, 0, -1):
        if N % d == 0 and d * bytes_per_sample_tile <= budget:
            return d
    return 1


# ---------------------------------------------------------------------------
# Training path: fused stats + normalize, one HBM read + one HBM write of x.
# ---------------------------------------------------------------------------
def _dsbn_train_kernel(gamma_ref, beta_ref, x_ref, o_ref, *, inv_cnt, eps):
    # x_ref: (Bg, TILE_C, HW) -- one domain group's slab for one channel tile.
    x = x_ref[...].astype(jnp.float32)
    # Per-channel batch statistics over the (Bg, HW) axes; centered variance
    # (numerically robust, and the block is VMEM-resident so it is free of
    # extra HBM traffic).
    mean = jnp.sum(jnp.sum(x, axis=2, keepdims=True),
                   axis=0, keepdims=True) * inv_cnt            # (1, TILE_C, 1)
    xc = x - mean
    var = jnp.sum(jnp.sum(xc * xc, axis=2, keepdims=True),
                  axis=0, keepdims=True) * inv_cnt             # (1, TILE_C, 1)
    inv = jax.lax.rsqrt(var + eps)
    scale = gamma_ref[...][None, :, :] * inv                   # (1, TILE_C, 1)
    shift = beta_ref[...][None, :, :]                          # (1, TILE_C, 1)
    o_ref[...] = (xc * scale + shift).astype(o_ref.dtype)


def _dsbn_train(x4, gamma3, beta3, tile_c, eps, vmem_limit):
    G, Bg, C, HW = x4.shape
    grid = (G, C // tile_c)
    kernel = functools.partial(
        _dsbn_train_kernel, inv_cnt=1.0 / float(Bg * HW), eps=float(eps))
    x_spec = pl.BlockSpec((pl.Squeezed(), Bg, tile_c, HW),
                          lambda g, ct: (g, 0, ct, 0))
    gb_spec = pl.BlockSpec((pl.Squeezed(), tile_c, 1),
                           lambda g, ct: (g, ct, 0))
    itemsize = jnp.dtype(x4.dtype).itemsize
    n_elem = G * Bg * C * HW
    return pl.pallas_call(
        kernel,
        out_shape=jax.ShapeDtypeStruct(x4.shape, x4.dtype),
        grid=grid,
        in_specs=[gb_spec, gb_spec, x_spec],
        out_specs=x_spec,
        compiler_params=pltpu.CompilerParams(
            dimension_semantics=("parallel", "parallel"),
            vmem_limit_bytes=vmem_limit),
        cost_estimate=pl.CostEstimate(
            flops=7 * n_elem,
            transcendentals=G * C,
            bytes_accessed=2 * n_elem * itemsize + 4 * G * C * 4),
    )(gamma3, beta3, x4)


# ---------------------------------------------------------------------------
# Eval path: y = x * scale_c + shift_c with folded running stats + affine 0.
# ---------------------------------------------------------------------------
def _dsbn_eval_kernel(scale_ref, shift_ref, x_ref, o_ref):
    # x_ref: (TILE_N, TILE_C, HW); scale/shift: (TILE_C, 1) per-channel.
    x = x_ref[...].astype(jnp.float32)
    o_ref[...] = (x * scale_ref[...][None, :, :]
                  + shift_ref[...][None, :, :]).astype(o_ref.dtype)


def _dsbn_eval(x3, scale2, shift2, tile_n, tile_c, vmem_limit):
    N, C, HW = x3.shape
    grid = (N // tile_n, C // tile_c)
    x_spec = pl.BlockSpec((tile_n, tile_c, HW), lambda n, ct: (n, ct, 0))
    ss_spec = pl.BlockSpec((tile_c, 1), lambda n, ct: (ct, 0))
    itemsize = jnp.dtype(x3.dtype).itemsize
    n_elem = N * C * HW
    return pl.pallas_call(
        _dsbn_eval_kernel,
        out_shape=jax.ShapeDtypeStruct(x3.shape, x3.dtype),
        grid=grid,
        in_specs=[ss_spec, ss_spec, x_spec],
        out_specs=x_spec,
        compiler_params=pltpu.CompilerParams(
            dimension_semantics=("parallel", "parallel"),
            vmem_limit_bytes=vmem_limit),
        cost_estimate=pl.CostEstimate(
            flops=2 * n_elem, transcendentals=0,
            bytes_accessed=2 * n_elem * itemsize + 2 * C * 4),
    )(scale2, shift2, x3)


# ---------------------------------------------------------------------------
# Wrapper matching DSBN2dConstBatch.forward
# ---------------------------------------------------------------------------
def dsbn2d_const_batch(x, gamma, beta, *, constant_batch,
                       running_mean=None, running_var=None,
                       training=True, eps=_BN_EPS,
                       tile_c=None, tile_n=None):
    """x: (N, C, H, W); gamma/beta: (num_bns, C). Returns (N, C, H, W)."""
    N, C, H, W = x.shape
    HW = H * W
    block_budget, vmem_limit = _vmem_budget()
    itemsize = jnp.dtype(x.dtype).itemsize

    if training:
        assert N % constant_batch == 0, (N, constant_batch)
        G = N // constant_batch
        Bg = constant_batch
        tc = int(tile_c) if tile_c is not None else _choose_tile_c(
            C, Bg * HW * itemsize, block_budget)
        assert C % tc == 0, (C, tc)
        # Pure relabeling of the contiguous NCHW buffer: no copies, no pads.
        x4 = x.reshape(G, Bg, C, HW)
        gamma3 = gamma[:G].astype(jnp.float32).reshape(G, C, 1)
        beta3 = beta[:G].astype(jnp.float32).reshape(G, C, 1)
        y = _dsbn_train(x4, gamma3, beta3, tc, eps, vmem_limit)
        return y.reshape(N, C, H, W)

    # Eval: bn_list[0] with its running statistics applied to the whole batch.
    inv = jax.lax.rsqrt(running_var.astype(jnp.float32) + eps)          # (C,)
    scale = gamma[0].astype(jnp.float32) * inv                          # (C,)
    shift = (beta[0].astype(jnp.float32)
             - running_mean.astype(jnp.float32) * scale)                # (C,)
    tc = int(tile_c) if tile_c is not None else _choose_tile_c(
        C, HW * itemsize, block_budget)
    assert C % tc == 0, (C, tc)
    tn = int(tile_n) if tile_n is not None else _choose_tile_n(
        N, tc * HW * itemsize, block_budget)
    assert N % tn == 0, (N, tn)
    x3 = x.reshape(N, C, HW)
    y = _dsbn_eval(x3, scale.reshape(C, 1), shift.reshape(C, 1),
                   tn, tc, vmem_limit)
    return y.reshape(N, C, H, W)


# ---------------------------------------------------------------------------
# Pure-JAX reference mirroring the PyTorch forward exactly.
# ---------------------------------------------------------------------------
def _reference(x, gamma, beta, constant_batch, running_mean=None,
               running_var=None, training=True, eps=_BN_EPS):
    N, C, H, W = x.shape
    if not training:
        inv = 1.0 / jnp.sqrt(running_var + eps)
        y = (x - running_mean[None, :, None, None]) * inv[None, :, None, None]
        return y * gamma[0][None, :, None, None] + beta[0][None, :, None, None]
    G = N // constant_batch
    xs = x.reshape(G, constant_batch, C, H, W).astype(jnp.float32)
    mean = xs.mean(axis=(1, 3, 4), keepdims=True)
    var = xs.var(axis=(1, 3, 4), keepdims=True)        # biased, like BN training
    y = (xs - mean) / jnp.sqrt(var + eps)
    y = y * gamma[:G][:, None, :, None, None] + beta[:G][:, None, :, None, None]
    return y.reshape(N, C, H, W).astype(x.dtype)


if __name__ == "__main__":
    key = jax.random.PRNGKey(0)
    k1, k2, k3, k4, k5 = jax.random.split(key, 5)

    # Small shapes consistent with the module: batch=4, channels=16, 16x16,
    # constant_batch=2 -> 2 independent BatchNorm2d "domains".
    N, C, H, W = 4, 16, 16, 16
    constant_batch = 2
    num_bns = N // constant_batch

    x = jax.random.normal(k1, (N, C, H, W), dtype=jnp.float32)
    gamma = 1.0 + 0.1 * jax.random.normal(k2, (num_bns, C), dtype=jnp.float32)
    beta = 0.1 * jax.random.normal(k3, (num_bns, C), dtype=jnp.float32)
    running_mean = 0.1 * jax.random.normal(k4, (C,), dtype=jnp.float32)
    running_var = 1.0 + 0.1 * jax.random.uniform(k5, (C,), dtype=jnp.float32)

    # tile_c=8 forces a (2 groups x 2 channel-tiles) grid even at this toy
    # size, exercising the fused channel-tiled path production shapes take.
    out = dsbn2d_const_batch(x, gamma, beta, constant_batch=constant_batch,
                             training=True, tile_c=8)
    out = jax.block_until_ready(out)
    ref = _reference(x, gamma, beta, constant_batch, training=True)
    assert out.shape == (N, C, H, W), out.shape
    assert jnp.allclose(out, ref, rtol=1e-4, atol=1e-4), (
        float(jnp.max(jnp.abs(out - ref))))

    # Default auto-tiled path (full-C blocks at this size).
    out_d = dsbn2d_const_batch(x, gamma, beta, constant_batch=constant_batch,
                               training=True)
    out_d = jax.block_until_ready(out_d)
    assert jnp.allclose(out_d, ref, rtol=1e-4, atol=1e-4), (
        float(jnp.max(jnp.abs(out_d - ref))))

    # Eval-mode path: bn_list[0] with running stats on the full batch.
    out_e = dsbn2d_const_batch(x, gamma, beta, constant_batch=constant_batch,
                               running_mean=running_mean,
                               running_var=running_var,
                               training=False, tile_c=8, tile_n=2)
    out_e = jax.block_until_ready(out_e)
    ref_e = _reference(x, gamma, beta, constant_batch, running_mean,
                       running_var, training=False)
    assert jnp.allclose(out_e, ref_e, rtol=1e-4, atol=1e-4), (
        float(jnp.max(jnp.abs(out_e - ref_e))))

    print("KERNEL_OK")
</pallas_src>

<mosaic_0001>
module attributes {stable_mosaic.version = 11 : i64} {
  func.func @_dsbn_train_kernel(%arg0: i32, %arg1: i32, %arg2: memref<1x8x1xf32, #tpu.memory_space<vmem>>, %arg3: memref<1x8x1xf32, #tpu.memory_space<vmem>>, %arg4: memref<1x2x8x256xf32, #tpu.memory_space<vmem>>, %arg5: memref<1x2x8x256xf32, #tpu.memory_space<vmem>>) attributes {dimension_semantics = [#tpu.dimension_semantics<parallel>, #tpu.dimension_semantics<parallel>], iteration_bounds = array<i64: 2, 2>, scalar_prefetch = 0 : i64, scratch_operands = 0 : i64, tpu.core_type = #tpu.core_type<tc>, window_params = [{transform_indices = @transform_0, window_bounds = array<i64: 1, 8, 1>}, {transform_indices = @transform_1, window_bounds = array<i64: 1, 8, 1>}, {transform_indices = @transform_2, window_bounds = array<i64: 1, 2, 8, 256>}, {transform_indices = @transform_3, window_bounds = array<i64: 1, 2, 8, 256>}]} {
    %c0 = arith.constant 0 : index
    %c0_0 = arith.constant 0 : index
    %c0_1 = arith.constant 0 : index
    %c0_2 = arith.constant 0 : index
    %0 = vector.load %arg4[%c0, %c0_0, %c0_1, %c0_2] : memref<1x2x8x256xf32, #tpu.memory_space<vmem>>, vector<1x2x8x256xf32>
    %1 = vector.shape_cast %0 : vector<1x2x8x256xf32> to vector<2x8x256xf32>
    %cst = arith.constant dense<0.000000e+00> : vector<2x8xf32>
    %2 = vector.multi_reduction <add>, %1, %cst [2] : vector<2x8x256xf32> to vector<2x8xf32>
    %3 = vector.shape_cast %2 : vector<2x8xf32> to vector<2x8x1xf32>
    %cst_3 = arith.constant dense<0.000000e+00> : vector<8x1xf32>
    %4 = vector.multi_reduction <add>, %3, %cst_3 [0] : vector<2x8x1xf32> to vector<8x1xf32>
    %5 = vector.shape_cast %4 : vector<8x1xf32> to vector<1x8x1xf32>
    %cst_4 = arith.constant 0.001953125 : f32
    %6 = vector.broadcast %cst_4 : f32 to vector<1x8x1xf32>
    %7 = arith.mulf %5, %6 : vector<1x8x1xf32>
    %8 = vector.broadcast %7 : vector<1x8x1xf32> to vector<2x8x256xf32>
    %9 = arith.subf %1, %8 : vector<2x8x256xf32>
    %10 = arith.mulf %9, %9 : vector<2x8x256xf32>
    %cst_5 = arith.constant dense<0.000000e+00> : vector<2x8xf32>
    %11 = vector.multi_reduction <add>, %10, %cst_5 [2] : vector<2x8x256xf32> to vector<2x8xf32>
    %12 = vector.shape_cast %11 : vector<2x8xf32> to vector<2x8x1xf32>
    %cst_6 = arith.constant dense<0.000000e+00> : vector<8x1xf32>
    %13 = vector.multi_reduction <add>, %12, %cst_6 [0] : vector<2x8x1xf32> to vector<8x1xf32>
    %14 = vector.shape_cast %13 : vector<8x1xf32> to vector<1x8x1xf32>
    %cst_7 = arith.constant 0.001953125 : f32
    %15 = vector.broadcast %cst_7 : f32 to vector<1x8x1xf32>
    %16 = arith.mulf %14, %15 : vector<1x8x1xf32>
    %cst_8 = arith.constant 9.99999974E-6 : f32
    %17 = vector.broadcast %cst_8 : f32 to vector<1x8x1xf32>
    %18 = arith.addf %16, %17 : vector<1x8x1xf32>
    %19 = math.rsqrt %18 : vector<1x8x1xf32>
    %c0_9 = arith.constant 0 : index
    %c0_10 = arith.constant 0 : index
    %c0_11 = arith.constant 0 : index
    %20 = vector.load %arg2[%c0_9, %c0_10, %c0_11] : memref<1x8x1xf32, #tpu.memory_space<vmem>>, vector<1x8x1xf32>
    %21 = vector.shape_cast %20 : vector<1x8x1xf32> to vector<8x1xf32>
    %22 = vector.shape_cast %21 : vector<8x1xf32> to vector<1x8x1xf32>
    %23 = arith.mulf %22, %19 : vector<1x8x1xf32>
    %c0_12 = arith.constant 0 : index
    %c0_13 = arith.constant 0 : index
    %c0_14 = arith.constant 0 : index
    %24 = vector.load %arg3[%c0_12, %c0_13, %c0_14] : memref<1x8x1xf32, #tpu.memory_space<vmem>>, vector<1x8x1xf32>
    %25 = vector.shape_cast %24 : vector<1x8x1xf32> to vector<8x1xf32>
    %26 = vector.shape_cast %25 : vector<8x1xf32> to vector<1x8x1xf32>
    %27 = vector.broadcast %23 : vector<1x8x1xf32> to vector<2x8x256xf32>
    %28 = arith.mulf %9, %27 : vector<2x8x256xf32>
    %29 = vector.broadcast %26 : vector<1x8x1xf32> to vector<2x8x256xf32>
    %30 = arith.addf %28, %29 : vector<2x8x256xf32>
    %c0_15 = arith.constant 0 : index
    %c0_16 = arith.constant 0 : index
    %c0_17 = arith.constant 0 : index
    %c0_18 = arith.constant 0 : index
    %31 = vector.load %arg5[%c0_15, %c0_16, %c0_17, %c0_18] : memref<1x2x8x256xf32, #tpu.memory_space<vmem>>, vector<1x2x8x256xf32>
    %32 = vector.shape_cast %31 : vector<1x2x8x256xf32> to vector<2x8x256xf32>
    %33 = vector.shape_cast %30 : vector<2x8x256xf32> to vector<1x2x8x256xf32>
    tpu.vector_store %arg5[%c0_15, %c0_16, %c0_17, %c0_18], %33 {strides = array<i32>} : memref<1x2x8x256xf32, #tpu.memory_space<vmem>>, vector<1x2x8x256xf32>,
    return
  }
  func.func @transform_0(%arg0: i32, %arg1: i32) -> (i32, i32, i32) {
    %c0_i32 = arith.constant 0 : i32
    %c0_i32_0 = arith.constant 0 : i32
    return %arg0, %arg1, %c0_i32 : i32, i32, i32
  }
  func.func @transform_1(%arg0: i32, %arg1: i32) -> (i32, i32, i32) {
    %c0_i32 = arith.constant 0 : i32
    %c0_i32_0 = arith.constant 0 : i32
    return %arg0, %arg1, %c0_i32 : i32, i32, i32
  }
  func.func @transform_2(%arg0: i32, %arg1: i32) -> (i32, i32, i32, i32) {
    %c0_i32 = arith.constant 0 : i32
    %c0_i32_0 = arith.constant 0 : i32
    %c0_i32_1 = arith.constant 0 : i32
    return %arg0, %c0_i32, %arg1, %c0_i32_0 : i32, i32, i32, i32
  }
  func.func @transform_3(%arg0: i32, %arg1: i32) -> (i32, i32, i32, i32) {
    %c0_i32 = arith.constant 0 : i32
    %c0_i32_0 = arith.constant 0 : i32
    %c0_i32_1 = arith.constant 0 : i32
    return %arg0, %c0_i32, %arg1, %c0_i32_0 : i32, i32, i32, i32
  }
}

</mosaic_0001>

<bundles_post_ra>
// kernel: tpu_custom_call.1
= control target key start
LH: loop header
LB: loop body
LE: loop exit
PB: predicated region body
PF: predicated region fallthrough
CT: control target
= control target key end

     0   :  { %8 = vsyncpa [#allocation3], 0  ;;  %s913_s0 = inlined_call_operand.vmem [shape: f32[2,16,1], index: 0, kind: input, shape index: {}]   ;;  %s914_s1 = inlined_call_operand.vmem [shape: f32[2,16,1], index: 1, kind: input, shape index: {}]   ;;  %s915_s2 = inlined_call_operand.hbm [shape: f32[2,2,16,256], index: 2, kind: input, shape index: {}]   ;;  %s916_s3 = inlined_call_operand.hbm [shape: f32[2,2,16,256], index: 3, kind: output, shape index: {}]  }
   0x1   :  { %10 = vsyncpa [#allocation3 + $0x1], 0 }
   0x2   :  { %11 = vsyncpa [#allocation4], 0 }
   0x3   :  { %13 = vsyncpa [#allocation4 + $0x1], 0  ;;  %s731_s12 = smov 0   ;;  %s733_s13 = smov 0  }
   0x4   :  { %s735_s14 = smov 0   ;;  %s737_s15 = smov 0  }
   0x5   :  { %s739_s16 = smov 0   ;;  %s741_s17 = smov 0  }
   0x6   :  { %s743_s18 = smov 0   ;;  %s745_s19 = smov 0  }
   0x7 LB: > { %s466_s20 = sadd.s32 4294967295, %s700_s19   ;;  %s467_s21 = sadd.s32 4294967294, %s700_s19   ;;  %s700_s19 = sphi %s745_s19, %s19_s19   ;;  %s696_s18 = sphi %s743_s18, %s934_s18   ;;  %s692_s17 = sphi %s741_s17, %s933_s17   ;;  %s688_s16 = sphi %s739_s16, %s932_s16   ;;  %s684_s15 = sphi %s737_s15, %s931_s15   ;;  %s680_s14 = sphi %s735_s14, %s930_s14   ;;  %s676_s13 = sphi %s733_s13, %s929_s13   ;;  %s672_s12 = sphi %s731_s12, %s928_s12  }
   0x8   : > { %s28_s22 = sadd.s32 1, %s692_s17  ;;  %s31_s23 = sadd.s32 1, %s696_s18 }
   0x9   : > { %p29_p0 = scmp.ge.s32.totalorder %s28_s22, 2  ;;  %s96_s24 = sadd.s32 1, %s680_s14 }
   0xa   : > { %p103_p1 = scmp.ne.s32.totalorder %s680_s14, %s676_s13  ;;  %p104_p2 = scmp.eq.s32.totalorder %s700_s19, 0 }
   0xb   : > { %s936_s22 = smov (%p29_p0, %s28_s22), 0  ;;  %s938_s23 = smov (!%p29_p0, %s31_s23), %s696_s18 }
   0xc   : > { %919 = sst [smem:[#allocation8_spill]] %s936_s22  ;;  %s92_s25 = ssub.s32 %s692_s17, %s936_s22 }
   0xd   : > { %p784_p3 = por %p104_p2, %p103_p1  ;;  %p33_p4 = scmp.ge.s32.totalorder %s938_s23, 2 }
   0xe   : > { %p109_p5 = scmp.ne.s32.totalorder %s676_s13, %s672_s12  ;;  %p110_p6 = scmp.eq.s32.totalorder %s466_s20, 0 }
   0xf   : > { %p135_p7 = scmp.eq.s32.totalorder %s466_s20, 3  ;;  %s940_s23 = smov (%p33_p4, %s938_s23), 0 }
  0x10   : > { %921 = sst [smem:[#allocation9_spill]] %s940_s23  ;;  %p792_p8 = por %p110_p6, %p109_p5 }
  0x11   : > { %p796_p9 = por %p135_p7, %p103_p1  ;;  %s91_s29 = ssub.s32 %s696_s18, %s940_s23 }
  0x12   : > { %p141_p10 = scmp.eq.s32.totalorder %s467_s21, 3  ;;  %s93_s30 = sor.u32 %s92_s25, %s91_s29 }
  0x13   : > { %p94_p11 = scmp.eq.s32.totalorder %s93_s30, 0  ;;  %p499_p13 = scmp.lt.s32.totalorder %s700_s19, 4 }
  0x14   : > { %p802_p12 = por %p141_p10, %p109_p5  ;;  %s183_s5 = sand.u32 1, %s680_s14  }
  0x15   : > { %s809_s6 = scalar_select %p94_p11, %s680_s14, %s96_s24  }
  0x16   : > { %s470_s7 = sshll.u32 %s183_s5, 5  ;;  %s471_s8 = sshll.u32 %s692_s17, 1 }
  0x17   : > { %s472_s9 = sshll.u32 %s696_s18, 3  ;;  %s187_s10 = scalar_lea.vmem [#allocation2], %s470_s7 }
  0x18   : > { %s196_s11 = sshll.u32 %s187_s10, 4  ;;  %s193_s20 = sadd.s32 %s472_s9, %s471_s8  ;;  %s197_s11 = int_to_ptr.vmem [resolvable:$true] %s196_s11 }
  0x19   : > { %s473_s23 = sshll.u32 %s193_s20, 7  ;;  %p815_p0 = pnand %p499_p13, %p784_p3 }
  0x1a   : > { %s195_s30 = scalar_lea.hbm %s915_s2, %s473_s23  ;;  %p474_p1 = scmp.ge.s32.totalorder %s700_s19, 1 }
  0x1b   : > { %s184_s24 = scalar_lea.sflag [#allocation3], %s183_s5  ;;  %p578_p2 = pneg %p815_p0 }
  0x1c   : > { %s589_s22 = scalar_lea.vmem %s197_s11, 512  ;;  %s702_s7 = smov [#allocation2]  }
  0x1d   : > { %p590_p4 = scmp.ne.s32.totalorder %s197_s11, %s589_s22  ;;  %s594_s8 = sshll.u32 %s702_s7, 4  ;;  %s595_s8 = int_to_ptr.vmem [resolvable:$false] %s594_s8 }
  0x1e   : > { %s596_s26 = scalar_lea.vmem %s595_s8, 1024  ;;  %p597_p3 = scmp.lt.s32.totalorder %s197_s11, %s595_s8 }
  0x1f   : > { %p592_p5 = pnand %p590_p4, %p578_p2  ;;  %p598_p7 = scmp.lt.s32.totalorder %s596_s26, %s589_s22 }
  0x21   : > { %p593_p6 = pneg %p592_p5  ;;  %p599_p10 = por %p598_p7, %p597_p3 }
  0x23   : > { %p600_p11 = pnand %p599_p10, %p593_p6 }
  0x25   : > { %603 = shalt.err (!%p600_p11)
}
  0x26   : > { %s703_s9 = smov 512   ;;  %s704_s23 = smov 256  }
  0x27   : > { %s705_s5 = smov 16   ;;  %p204_p13 = scmp.lt.s32.totalorder %s700_s19, 5 }
  0x28   : > { %494 = dma.hbm_to_vmem [thread:$0]  (!%p815_p0), %s195_s30, 512, %s197_s11, %s184_s24, %s703_s9, %s704_s23, %s705_s5  }
  0x29   : > { %p205_p2 = pnand %p474_p1, %p204_p13 }
  0x2a   : > { %s831_s10 = sand.u32 (!%p205_p2), 1, %s676_s13  }
  0x2b   : > { %208 = sbr.rel (%p205_p2) target bundleno = 512 (0x200), region = 32  ;;  %s475_s22 = sshll.u32 (!%p205_p2), %s831_s10, 5 }
  0x2c   : > { %s211_s20 = scalar_lea.sflag (!%p205_p2), [#allocation3], %s831_s10  ;;  %s214_s25 = scalar_lea.vmem (!%p205_p2), [#allocation2], %s475_s22 }
  0x30   : > { %663 = dma.done.wait (%p792_p8), %s211_s20, 512  }
  0x31   : > { %665 = vsyncadd (%p792_p8), %s211_s20, 4294966784  ;;  %v269_v0 = vld [vmem:[%s214_s25] sm:$0xff]  ;;  %v270_v1 = vld [vmem:[%s214_s25 + $0x8] sm:$0xff]  ;;  %v706_v20 = vmov 0   ;;  %p253_p8 = scmp.lt.s32.totalorder %s688_s16, 1  ;;  %p255_p0 = scmp.lt.s32.totalorder %s684_s15, 1 }
  0x32   : > { %v271_v2 = vld [vmem:[%s214_s25 + $0x10] sm:$0xff]  ;;  %v273_v3 = vadd.f32 %v270_v1, %v269_v0  ;;  %v272_v4 = vld [vmem:[%s214_s25 + $0x18] sm:$0xff]  ;;  %572 = vset.pattern.permute.xlu0 %v706_v20  ;;  %573 = vset.pattern.permute.xlu1 %v706_v20  ;;  %s482_s5 = sshll.u32 %s684_s15, 1  ;;  %s483_s20 = sshll.u32 %s688_s16, 3 }
  0x33   : > { %v276_v5 = vadd.f32 %v272_v4, %v271_v2  ;;  %s254_s27 = scalar_select %p253_p8, %s688_s16, 1 }
  0x34   : > { %274 = vadd.xlane.f32.xlu0 %v273_v3  ;;  %s256_s11 = scalar_select %p255_p0, %s684_s15, 1 }
  0x35   : > { %s477_s21 = sshll.u32 %s254_s27, 1  ;;  %s337_s25 = sadd.s32 %s483_s20, %s482_s5 }
  0x36   : > { %s258_s29 = sadd.s32 %s477_s21, %s256_s11  ;;  %s252_s27 = scalar_lea.vmem [#allocation5], %s475_s22 }
  0x37   : > { %s478_s30 = sshll.u32 %s258_s29, 3  ;;  %s340_s11 = sshll.u32 %s252_s27, 4  ;;  %s855_s11 = int_to_ptr.vmem [resolvable:$true] %s340_s11 }
  0x38   : > { %277 = vadd.xlane.f32.xlu0 %v276_v5  ;;  %s268_s8 = scalar_lea.vmem %s914_s1, %s478_s30  ;;  %s260_s23 = scalar_lea.vmem %s913_s0, %s478_s30 }
  0x39   : > { %v301_v21 = vld [vmem:[%s268_s8] sm:$0xff]  ;;  %s484_s21 = sshll.u32 %s337_s25, 7  ;;  %s325_s16 = scalar_lea.sflag [#allocation4], %s831_s10 }
  0x3a   : > { %v299_v27 = vld [vmem:[%s260_s23] sm:$0xff]  ;;  %s860_s15 = scalar_lea.hbm %s916_s3, %s484_s21  ;;  %s604_s22 = scalar_lea.vmem %s855_s11, 512 }
  0x3b   : > { %p605_p1 = scmp.ne.s32.totalorder %s855_s11, %s604_s22  ;;  %s707_s24 = smov [#allocation5]  }
  0x3c   : > { %s608_s7 = sshll.u32 %s707_s24, 4  ;;  %s609_s7 = int_to_ptr.vmem [resolvable:$false] %s608_s7 }
  0x3d   : > { %p606_p4 = pnand %p605_p1, %p796_p9  ;;  %s610_s8 = scalar_lea.vmem %s609_s7, 1024 }
  0x3e   : > { %p611_p6 = scmp.lt.s32.totalorder %s855_s11, %s609_s7  ;;  %p612_p3 = scmp.lt.s32.totalorder %s610_s8, %s604_s22 }
  0x3f   : > { %p607_p5 = pneg %p606_p4 }
  0x40   : > { %p613_p7 = por %p612_p3, %p611_p6 }
  0x42   : > { %p614_p10 = pnand %p613_p7, %p607_p5 }
  0xbd   : > { %v275_v6 = vpop.xlane.xlu0 %274 }
  0xc1   : > { %v278_v7 = vpop.xlane.xlu0 %277 }
  0xc2   : > { %v279_v8 = vadd.f32 %v278_v7, %v275_v6 }
  0xc4   : > { %v280_v9 = vmul.f32 0.001953125, %v279_v8 }
  0xc6   : > { %v281_v10 = vsub.f32 %v269_v0, %v280_v9  ;;  %v282_v11 = vsub.f32 %v270_v1, %v280_v9  ;;  %v283_v12 = vsub.f32 %v271_v2, %v280_v9  ;;  %v284_v13 = vsub.f32 %v272_v4, %v280_v9 }
  0xc8   : > { %v285_v14 = vmul.f32 %v281_v10, %v281_v10  ;;  %v286_v15 = vmul.f32 %v282_v11, %v282_v11  ;;  %v287_v17 = vmul.f32 %v283_v12, %v283_v12  ;;  %v288_v18 = vmul.f32 %v284_v13, %v284_v13 }
  0xca   : > { %v289_v16 = vadd.f32 %v286_v15, %v285_v14  ;;  %v292_v19 = vadd.f32 %v288_v18, %v287_v17 }
  0xcc   : > { %290 = vadd.xlane.f32.xlu1 %v289_v16 }
  0xd0   : > { %293 = vadd.xlane.f32.xlu1 %v292_v19 }
  0xe1   : > { %313 = vperm.xlu1 %573, %v301_v21  }
 0x155   : > { %v291_v22 = vpop.xlane.xlu1 %290 }
 0x159   : > { %v294_v23 = vpop.xlane.xlu1 %293 }
 0x15a   : > { %v295_v24 = vadd.f32 %v294_v23, %v291_v22 }
 0x15c   : > { %v296_v25 = vmul.f32 0.001953125, %v295_v24 }
 0x15d   : > { %v314_v31 = vpop.permute.xlu1 %313 }
 0x15e   : > { %v297_v26 = vadd.f32 1e-05, %v296_v25 }
 0x160   : > { %574 = vrsqrt.f32 %v297_v26 }
 0x16d   : > { %v575_v28 = vpop.eup %574 }
 0x16e   : > { %v300_v29 = vmul.f32 %v575_v28, %v299_v27 }
 0x170   : > { %304 = vperm.xlu0 %572, %v300_v29  }
 0x1eb   : > { %v305_v30 = vpop.permute.xlu0 %304 }
 0x1ec   : > { %v307_v32 = vmul.f32 %v305_v30, %v281_v10  ;;  %v308_v33 = vmul.f32 %v305_v30, %v282_v11  ;;  %v309_v34 = vmul.f32 %v305_v30, %v283_v12  ;;  %v310_v35 = vmul.f32 %v305_v30, %v284_v13 }
 0x1ee   : > { %v316_v36 = vadd.f32 %v314_v31, %v307_v32  ;;  %v317_v37 = vadd.f32 %v314_v31, %v308_v33  ;;  %v318_v38 = vadd.f32 %v314_v31, %v309_v34  ;;  %v319_v39 = vadd.f32 %v314_v31, %v310_v35 }
 0x1f0   : > { %320 = vst [vmem:[%s252_s27] sm:$0xff] %v316_v36  ;;  %321 = vst [vmem:[%s252_s27 + $0x8] sm:$0xff] %v317_v37 }
 0x1f1   : > { %322 = vst [vmem:[%s252_s27 + $0x10] sm:$0xff] %v318_v38  ;;  %323 = vst [vmem:[%s252_s27 + $0x18] sm:$0xff] %v319_v39 }
 0x1f2   : > { %617 = shalt.err (!%p614_p10)
}
 0x1f3   : > { %s618_s26 = scalar_lea.hbm %s860_s15, 512  ;;  %s622_s5 = scalar_lea.hbm %s916_s3, 2048 }
 0x1f4   : > { %p619_p11 = scmp.ne.s32.totalorder %s860_s15, %s618_s26  ;;  %p623_p8 = scmp.lt.s32.totalorder %s860_s15, %s916_s3 }
 0x1f5   : > { %p624_p0 = scmp.lt.s32.totalorder %s622_s5, %s618_s26 }
 0x1f6   : > { %p620_p13 = pnand %p619_p11, %p796_p9 }
 0x1f7   : > { %p625_p1 = por %p624_p0, %p623_p8 }
 0x1f8   : > { %p621_p2 = pneg %p620_p13 }
 0x1fa   : > { %p626_p4 = pnand %p625_p1, %p621_p2 }
 0x1fc   : > { %629 = shalt.err (!%p626_p4)
}
 0x1fd   : > { %s708_s27 = smov 256   ;;  %s709_s21 = smov 512  }
 0x1fe   : > { %s710_s29 = smov 16  }
 0x1ff   : > { %489 = dma.vmem_to_hbm [thread:$0]  (%p796_p9), %s855_s11, 512, %s860_s15, %s325_s16, %s708_s27, %s709_s21, %s710_s29  }
 0x200 PF: > { %p500_p5 = scmp.ge.s32.totalorder %s700_s19, 2  ;;  %s355_s30 = sand.u32 1, %s672_s12  }
 0x201   : > { %s356_s22 = scalar_lea.sflag [#allocation4], %s355_s30 }
 0x202   : > { %p496_p6 = pnand %p500_p5, %p802_p12 }
 0x204   : > { %p497_p3 = pneg %p496_p6 }
 0x206   : > { %667 = dma.done.wait (%p497_p3), %s356_s22, 512  }
 0x207   : > { %669 = vsyncadd (%p497_p3), %s356_s22, 4294966784  ;;  %s19_s19 = sadd.s32 1, %s700_s19   ;;  %s926_s28 = sld [smem:[#allocation8_spill]] }
 0x208   : > { %p16_p7 = scmp.ge.s32.totalorder %s19_s19, 6   ;;  %s927_s10 = sld [smem:[#allocation9_spill]] }
 0x209   : > { %s928_s12 = smov %s676_s13  ;;  %s929_s13 = smov %s680_s14 }
 0x20a   : > { %s930_s14 = smov %s809_s6  ;;  %s931_s15 = smov %s692_s17 }
 0x20b   : > { %s932_s16 = smov %s696_s18  ;;  %18 = sbr.rel (!%p16_p7) target bundleno = 7 (0x7), region = 83 }
 0x20d   : > { %s933_s17 = smov %s926_s28 }
 0x20e   : > { %s934_s18 = smov %s927_s10 }
 0x210   :  { %361 = vsyncpa [#allocation3], 1 }
 0x211   :  { %363 = vsyncpa [#allocation3 + $0x1], 1 }
 0x212   :  { %364 = vsyncpa [#allocation4], 1 }
 0x213   :  { %366 = vsyncpa [#allocation4 + $0x1], 1 }

</bundles_post_ra>
